<compile_context>
chip_gen: v7x
topology: tpu7x:2x2x1
jax: 0.10.0
libtpu: 0.0.40
codegen_flags: <defaults>
</compile_context>

<pallas_src>
import math

import jax
import jax.numpy as jnp
from jax.experimental import pallas as pl
from jax.experimental.pallas import tpu as pltpu

BN_EPS = 1e-5     # torch.nn.BatchNorm1d default
L2_EPS = 1e-12    # torch.nn.functional.normalize default


# --------------------------------------------------------------------------
# Fused kernel: [IDE | Ex] embedding matmul (+BN folded) + ReLU + classifier
# --------------------------------------------------------------------------
def _fused_kernel(x_ref, w_ref, b_ref, cw_ref, cb_ref, pred_ref, ex_ref):
    # Grid: (batch blocks i  [parallel], output-feature blocks j [arbitrary]).
    # j == 0 is the whole IDE branch (tn == ide_fea); j >= 1 are Ex blocks.
    j = pl.program_id(1)

    # bf16 MXU inputs with f32 accumulation; bias already has BN folded in.
    y = jnp.dot(x_ref[...].astype(jnp.bfloat16), w_ref[...],
                preferred_element_type=jnp.float32) + b_ref[...]

    @pl.when(j == 0)
    def _():
        # IDE branch: ReLU then classifier, written straight to pred output
        # (pred block index is constant over j -> stays resident, written once).
        relu = jnp.maximum(y, 0.0)
        pred = jnp.dot(relu.astype(jnp.bfloat16), cw_ref[...],
                       preferred_element_type=jnp.float32) + cb_ref[...]
        pred_ref[...] = pred.astype(pred_ref.dtype)

    @pl.when(j > 0)
    def _():
        # Ex branch: raw (BN-folded) embedding; L2-normalize happens in the
        # XLA wrapper (one rsqrt on a (B, ex_fea) array).
        ex_ref[...] = y.astype(ex_ref.dtype)


def _vmem_limit_bytes(tb, fin, tn, c_pad, ide_fea):
    est = (2 * fin * tn * 2            # double-buffered bf16 weight block
           + 2 * tb * fin * 4          # pooled input block
           + 2 * tn * 4                # bias block
           + 2 * ide_fea * c_pad * 2   # classifier weight (resident)
           + 2 * c_pad * 4             # classifier bias
           + 2 * tb * c_pad * 4        # pred output block
           + 2 * tb * tn * 4)          # ex output block
    # 2x margin for compiler scratch; lift v5e's 16 MiB default, stay under
    # v7x's 64 MiB physical VMEM.
    return int(min(max(2 * est, 32 << 20), 56 << 20))


def fused_pool_forward(pool5, prep):
    """pool5: (B, Fin) f32 (already T-averaged).  Returns
    (pred_pad (B, c_pad) f32, ex_raw (B, ex_fea) f32, un-normalized)."""
    B, Fin = pool5.shape
    ide_fea, ex_fea, tn = prep["ide_fea"], prep["ex_fea"], prep["tn"]
    nb = (ide_fea + ex_fea) // tn
    c_pad = prep["cls_w"].shape[1]

    tb = B if B <= 256 else 256        # either full-B block or 8-aligned tile
    grid = (pl.cdiv(B, tb), nb)

    return pl.pallas_call(
        _fused_kernel,
        out_shape=(jax.ShapeDtypeStruct((B, c_pad), jnp.float32),
                   jax.ShapeDtypeStruct((B, ex_fea), jnp.float32)),
        grid=grid,
        in_specs=[
            # pooled activations: changes with batch block only
            pl.BlockSpec((tb, Fin), lambda i, j: (i, 0)),
            # pre-tiled weights (N//tn, Fin, tn): one contiguous block per j
            pl.BlockSpec((None, Fin, tn), lambda i, j: (j, 0, 0)),
            # BN-folded bias
            pl.BlockSpec((1, tn), lambda i, j: (0, j)),
            # classifier weight / bias: grid-invariant, stay resident
            pl.BlockSpec((ide_fea, c_pad), lambda i, j: (0, 0)),
            pl.BlockSpec((1, c_pad), lambda i, j: (0, 0)),
        ],
        out_specs=(
            # classifier logits: written only at j == 0, resident across j
            pl.BlockSpec((tb, c_pad), lambda i, j: (i, 0)),
            # Ex embedding: j=1 -> block 0, j=2 -> block 1 (j=0 maps to block 0
            # but is not written; it is fully rewritten at j=1 before flush)
            pl.BlockSpec((tb, tn), lambda i, j: (i, jnp.maximum(j - 1, 0))),
        ),
        compiler_params=pltpu.CompilerParams(
            dimension_semantics=("parallel", "arbitrary"),
            vmem_limit_bytes=_vmem_limit_bytes(tb, Fin, tn, c_pad, ide_fea)),
    )(pool5, prep["w_tiled"], prep["b_cat"], prep["cls_w"], prep["cls_b"])


# --------------------------------------------------------------------------
# Parameter init (mirrors AvgPooling.__init__) and one-time inference prep
# --------------------------------------------------------------------------
def init_params(key, input_feature_size, num_classes, ide_fea=1024, ex_fea=2048):
    ks = jax.random.split(key, 7)
    f32 = jnp.float32
    # BN running stats randomized to stand in for a trained model (a freshly
    # constructed PyTorch module has mean=0, var=1; the eval-mode BN math is
    # identical either way).
    return {
        # kaiming_normal_(mode='fan_out') on Linear weight (out, in): std=sqrt(2/out)
        "IDE_w": jax.random.normal(ks[0], (ide_fea, input_feature_size), f32)
                 * math.sqrt(2.0 / ide_fea),
        "IDE_b": jnp.zeros((ide_fea,), f32),
        "IDE_bn_gamma": jnp.ones((ide_fea,), f32),
        "IDE_bn_beta": jnp.zeros((ide_fea,), f32),
        "IDE_bn_mean": 0.1 * jax.random.normal(ks[1], (ide_fea,), f32),
        "IDE_bn_var": jax.random.uniform(ks[2], (ide_fea,), f32, 0.5, 1.5),
        "Ex_w": jax.random.normal(ks[3], (ex_fea, input_feature_size), f32)
                * math.sqrt(2.0 / ex_fea),
        "Ex_b": jnp.zeros((ex_fea,), f32),
        "Ex_bn_gamma": jnp.ones((ex_fea,), f32),
        "Ex_bn_beta": jnp.zeros((ex_fea,), f32),
        "Ex_bn_mean": 0.1 * jax.random.normal(ks[4], (ex_fea,), f32),
        "Ex_bn_var": jax.random.uniform(ks[5], (ex_fea,), f32, 0.5, 1.5),
        # classify_fc: normal(std=0.001), bias 0
        "cls_w": jax.random.normal(ks[6], (num_classes, ide_fea), f32) * 0.001,
        "cls_b": jnp.zeros((num_classes,), f32),
    }


def prepare_params(p):
    """One-time precompute outside the kernels: fold eval-mode BN into the
    linear weights/bias, pre-transpose to (Fin, N), cast to bf16, concatenate
    IDE/Ex along the output axis, pre-tile the weights to (N//tn, Fin, tn) for
    contiguous per-step DMA, and zero-pad the classifier to 128-lane width."""
    def fold(w, b, gamma, beta, mean, var):
        s = gamma * jax.lax.rsqrt(var + BN_EPS)                 # (N,)
        w_t = w.astype(jnp.float32).T * s[None, :]              # (Fin, N)
        b_f = (b - mean) * s + beta
        return w_t, b_f

    ide_w, ide_b = fold(p["IDE_w"], p["IDE_b"], p["IDE_bn_gamma"],
                        p["IDE_bn_beta"], p["IDE_bn_mean"], p["IDE_bn_var"])
    ex_w, ex_b = fold(p["Ex_w"], p["Ex_b"], p["Ex_bn_gamma"],
                      p["Ex_bn_beta"], p["Ex_bn_mean"], p["Ex_bn_var"])
    Fin = ide_w.shape[0]
    ide_fea, ex_fea = ide_w.shape[1], ex_w.shape[1]

    # The classifier is fused under pl.when(j == 0), which needs the entire
    # IDE branch inside a single grid step -> tn == ide_fea.  Megacore
    # balance comes from the (parallel) batch axis, not the N axis.
    tn = ide_fea
    assert tn % 128 == 0, "IDE width must be lane-aligned (multiple of 128)"
    assert ex_fea % tn == 0, "Ex width must be a multiple of the IDE width"
    N = ide_fea + ex_fea
    nb = N // tn

    w_cat = jnp.concatenate([ide_w, ex_w], axis=1).astype(jnp.bfloat16)  # (Fin, N)
    w_tiled = w_cat.reshape(Fin, nb, tn).transpose(1, 0, 2)              # (nb, Fin, tn)
    b_cat = jnp.concatenate([ide_b, ex_b]).reshape(1, -1).astype(jnp.float32)

    num_classes = p["cls_w"].shape[0]
    c_pad = int(pl.cdiv(num_classes, 128)) * 128
    cls_w = jnp.zeros((ide_fea, c_pad), jnp.bfloat16)
    cls_w = cls_w.at[:, :num_classes].set(p["cls_w"].T.astype(jnp.bfloat16))
    cls_b = jnp.zeros((1, c_pad), jnp.float32)
    cls_b = cls_b.at[0, :num_classes].set(p["cls_b"])

    return dict(w_tiled=w_tiled, b_cat=b_cat, cls_w=cls_w, cls_b=cls_b,
                ide_fea=ide_fea, ex_fea=ex_fea, tn=tn, num_classes=num_classes)


# --------------------------------------------------------------------------
# Forward
# --------------------------------------------------------------------------
def avg_pooling_forward(inputs, prep):
    """Returns (predict, Ex_feat), matching AvgPooling.forward's training
    branch (dropout = inference identity, BN = running stats)."""
    # pool5 hoisted out of the kernel (cheap XLA reduction; the kernel input
    # shrinks from (B, T, Fin) to (B, Fin)).
    pool5 = jnp.mean(inputs, axis=1)                               # (B, Fin) f32
    pred_pad, ex_raw = fused_pool_forward(pool5, prep)
    predict = pred_pad[:, :prep["num_classes"]]                    # drop pad lanes
    # L2-normalize (torch F.normalize p=2, dim=1) with a single rsqrt; eps
    # clamps the squared sum rather than the norm (equivalent at 1e-12).
    sumsq = jnp.sum(ex_raw * ex_raw, axis=1, keepdims=True)
    ex_feat = ex_raw * jax.lax.rsqrt(jnp.maximum(sumsq, L2_EPS * L2_EPS))
    return predict, ex_feat


def _reference_forward(inputs, p):
    """Pure-JAX f32 reference mirroring the PyTorch module (eval BN, no fold)."""
    pool5 = jnp.mean(inputs, axis=1)
    y = pool5 @ p["IDE_w"].T + p["IDE_b"]
    y = (y - p["IDE_bn_mean"]) * jax.lax.rsqrt(p["IDE_bn_var"] + BN_EPS) \
        * p["IDE_bn_gamma"] + p["IDE_bn_beta"]
    y = jnp.maximum(y, 0.0)
    predict = y @ p["cls_w"].T + p["cls_b"]
    e = pool5 @ p["Ex_w"].T + p["Ex_b"]
    e = (e - p["Ex_bn_mean"]) * jax.lax.rsqrt(p["Ex_bn_var"] + BN_EPS) \
        * p["Ex_bn_gamma"] + p["Ex_bn_beta"]
    ex_feat = e / jnp.maximum(
        jnp.sqrt(jnp.sum(e * e, axis=1, keepdims=True)), L2_EPS)
    return predict, ex_feat


if __name__ == "__main__":
    B, T, Fin = 2, 8, 32          # small shapes: batch=2, crops=8, feature=32
    num_classes = 16

    key = jax.random.PRNGKey(0)
    kx, kp = jax.random.split(key)
    inputs = jax.random.normal(kx, (B, T, Fin), jnp.float32)
    raw_params = init_params(kp, Fin, num_classes)
    prep = prepare_params(raw_params)

    predict, ex_feat = avg_pooling_forward(inputs, prep)
    jax.block_until_ready((predict, ex_feat))

    ref_predict, ref_ex = _reference_forward(inputs, raw_params)
    assert predict.shape == (B, num_classes)
    assert ex_feat.shape == (B, 2048)
    # bf16 weights + bf16 MXU activations vs f32 reference -> loose tolerance
    assert jnp.allclose(predict, ref_predict, atol=2e-2, rtol=2e-2), \
        float(jnp.max(jnp.abs(predict - ref_predict)))
    assert jnp.allclose(ex_feat, ref_ex, atol=2e-2, rtol=2e-2), \
        float(jnp.max(jnp.abs(ex_feat - ref_ex)))

    print("KERNEL_OK")
</pallas_src>

<mosaic_0001>
module attributes {stable_mosaic.version = 11 : i64} {
  func.func @_fused_kernel(%arg0: i32, %arg1: i32, %arg2: memref<2x32xf32, #tpu.memory_space<vmem>>, %arg3: memref<1x32x1024xbf16, #tpu.memory_space<vmem>>, %arg4: memref<1x1024xf32, #tpu.memory_space<vmem>>, %arg5: memref<1024x128xbf16, #tpu.memory_space<vmem>>, %arg6: memref<1x128xf32, #tpu.memory_space<vmem>>, %arg7: memref<2x128xf32, #tpu.memory_space<vmem>>, %arg8: memref<2x1024xf32, #tpu.memory_space<vmem>>) attributes {dimension_semantics = [#tpu.dimension_semantics<parallel>, #tpu.dimension_semantics<arbitrary>], iteration_bounds = array<i64: 1, 3>, scalar_prefetch = 0 : i64, scratch_operands = 0 : i64, tpu.core_type = #tpu.core_type<tc>, window_params = [{transform_indices = @transform_0, window_bounds = array<i64: 2, 32>}, {transform_indices = @transform_1, window_bounds = array<i64: 1, 32, 1024>}, {transform_indices = @transform_2, window_bounds = array<i64: 1, 1024>}, {pipeline_mode = #tpu.pipeline_mode<synchronous>, transform_indices = @transform_3, window_bounds = array<i64: 1024, 128>}, {pipeline_mode = #tpu.pipeline_mode<synchronous>, transform_indices = @transform_4, window_bounds = array<i64: 1, 128>}, {transform_indices = @transform_5, window_bounds = array<i64: 2, 128>}, {transform_indices = @transform_6, window_bounds = array<i64: 2, 1024>}]} {
    %c0 = arith.constant 0 : index
    %c0_0 = arith.constant 0 : index
    %0 = vector.load %arg2[%c0, %c0_0] : memref<2x32xf32, #tpu.memory_space<vmem>>, vector<2x32xf32>
    %1 = arith.truncf %0 : vector<2x32xf32> to vector<2x32xbf16>
    %c0_1 = arith.constant 0 : index
    %c0_2 = arith.constant 0 : index
    %c0_3 = arith.constant 0 : index
    %2 = vector.load %arg3[%c0_1, %c0_2, %c0_3] : memref<1x32x1024xbf16, #tpu.memory_space<vmem>>, vector<1x32x1024xbf16>
    %3 = vector.shape_cast %2 : vector<1x32x1024xbf16> to vector<32x1024xbf16>
    %cst = arith.constant dense<0.000000e+00> : vector<2x1024xf32>
    %4 = tpu.matmul %1, %3, %cst {dimension_numbers = #tpu.dot_dimension_numbers<[1], [0], [0], [1], [0, 0, 1, 1], [], []>} : vector<2x32xbf16>, vector<32x1024xbf16>, vector<2x1024xf32> -> vector<2x1024xf32>
    %c0_4 = arith.constant 0 : index
    %c0_5 = arith.constant 0 : index
    %5 = vector.load %arg4[%c0_4, %c0_5] : memref<1x1024xf32, #tpu.memory_space<vmem>>, vector<1x1024xf32>
    %6 = vector.broadcast %5 : vector<1x1024xf32> to vector<2x1024xf32>
    %7 = arith.addf %4, %6 : vector<2x1024xf32>
    %c0_i32 = arith.constant 0 : i32
    %8 = arith.cmpi eq, %arg1, %c0_i32 : i32
    %9 = arith.extui %8 : i1 to i32
    %c0_i32_6 = arith.constant 0 : i32
    %10 = arith.cmpi ne, %9, %c0_i32_6 : i32
    scf.if %10 {
      %cst_9 = arith.constant 0.000000e+00 : f32
      %14 = vector.broadcast %cst_9 : f32 to vector<2x1024xf32>
      %15 = arith.maximumf %7, %14 : vector<2x1024xf32>
      %16 = arith.truncf %15 : vector<2x1024xf32> to vector<2x1024xbf16>
      %c0_10 = arith.constant 0 : index
      %c0_11 = arith.constant 0 : index
      %17 = vector.load %arg5[%c0_10, %c0_11] : memref<1024x128xbf16, #tpu.memory_space<vmem>>, vector<1024x128xbf16>
      %cst_12 = arith.constant dense<0.000000e+00> : vector<2x128xf32>
      %18 = tpu.matmul %16, %17, %cst_12 {dimension_numbers = #tpu.dot_dimension_numbers<[1], [0], [0], [1], [0, 0, 1, 1], [], []>} : vector<2x1024xbf16>, vector<1024x128xbf16>, vector<2x128xf32> -> vector<2x128xf32>
      %c0_13 = arith.constant 0 : index
      %c0_14 = arith.constant 0 : index
      %19 = vector.load %arg6[%c0_13, %c0_14] : memref<1x128xf32, #tpu.memory_space<vmem>>, vector<1x128xf32>
      %20 = vector.broadcast %19 : vector<1x128xf32> to vector<2x128xf32>
      %21 = arith.addf %18, %20 : vector<2x128xf32>
      %c0_15 = arith.constant 0 : index
      %c0_16 = arith.constant 0 : index
      %22 = vector.load %arg7[%c0_15, %c0_16] : memref<2x128xf32, #tpu.memory_space<vmem>>, vector<2x128xf32>
      tpu.vector_store %arg7[%c0_15, %c0_16], %21 {strides = array<i32>} : memref<2x128xf32, #tpu.memory_space<vmem>>, vector<2x128xf32>,
    } else {
    }
    %c0_i32_7 = arith.constant 0 : i32
    %11 = arith.cmpi sgt, %arg1, %c0_i32_7 : i32
    %12 = arith.extui %11 : i1 to i32
    %c0_i32_8 = arith.constant 0 : i32
    %13 = arith.cmpi ne, %12, %c0_i32_8 : i32
    scf.if %13 {
      %c0_9 = arith.constant 0 : index
      %c0_10 = arith.constant 0 : index
      %14 = vector.load %arg8[%c0_9, %c0_10] : memref<2x1024xf32, #tpu.memory_space<vmem>>, vector<2x1024xf32>
      tpu.vector_store %arg8[%c0_9, %c0_10], %7 {strides = array<i32>} : memref<2x1024xf32, #tpu.memory_space<vmem>>, vector<2x1024xf32>,
    } else {
    }
    return
  }
  func.func @transform_0(%arg0: i32, %arg1: i32) -> (i32, i32) {
    %c0_i32 = arith.constant 0 : i32
    %c0_i32_0 = arith.constant 0 : i32
    return %arg0, %c0_i32 : i32, i32
  }
  func.func @transform_1(%arg0: i32, %arg1: i32) -> (i32, i32, i32) {
    %c0_i32 = arith.constant 0 : i32
    %c0_i32_0 = arith.constant 0 : i32
    %c0_i32_1 = arith.constant 0 : i32
    return %arg1, %c0_i32, %c0_i32_0 : i32, i32, i32
  }
  func.func @transform_2(%arg0: i32, %arg1: i32) -> (i32, i32) {
    %c0_i32 = arith.constant 0 : i32
    %c0_i32_0 = arith.constant 0 : i32
    return %c0_i32, %arg1 : i32, i32
  }
  func.func @transform_3(%arg0: i32, %arg1: i32) -> (i32, i32) {
    %c0_i32 = arith.constant 0 : i32
    %c0_i32_0 = arith.constant 0 : i32
    %c0_i32_1 = arith.constant 0 : i32
    return %c0_i32, %c0_i32_0 : i32, i32
  }
  func.func @transform_4(%arg0: i32, %arg1: i32) -> (i32, i32) {
    %c0_i32 = arith.constant 0 : i32
    %c0_i32_0 = arith.constant 0 : i32
    %c0_i32_1 = arith.constant 0 : i32
    return %c0_i32, %c0_i32_0 : i32, i32
  }
  func.func @transform_5(%arg0: i32, %arg1: i32) -> (i32, i32) {
    %c0_i32 = arith.constant 0 : i32
    %c0_i32_0 = arith.constant 0 : i32
    return %arg0, %c0_i32 : i32, i32
  }
  func.func @transform_6(%arg0: i32, %arg1: i32) -> (i32, i32) {
    %c1_i32 = arith.constant 1 : i32
    %0 = arith.subi %arg1, %c1_i32 : i32
    %c0_i32 = arith.constant 0 : i32
    %1 = arith.maxsi %0, %c0_i32 : i32
    %c0_i32_0 = arith.constant 0 : i32
    return %arg0, %1 : i32, i32
  }
}

</mosaic_0001>

<bundles_post_ra>
// kernel: tpu_custom_call.1
= control target key start
LH: loop header
LB: loop body
LE: loop exit
PB: predicated region body
PF: predicated region fallthrough
CT: control target
= control target key end

     0   :  { %s2719_s0 = inlined_call_operand.hbm [shape: f32[2,32], index: 0, kind: input, shape index: {}]   ;;  %s2720_s1 = inlined_call_operand.hbm [shape: bf16[3,32,1024], index: 1, kind: input, shape index: {}]   ;;  %s2721_s2 = inlined_call_operand.hbm [shape: f32[1,3072], index: 2, kind: input, shape index: {}]   ;;  %s2722_s3 = inlined_call_operand.hbm [shape: bf16[1024,128], index: 3, kind: input, shape index: {}]   ;;  %s2723_s4 = inlined_call_operand.vmem [shape: f32[1,128], index: 4, kind: input, shape index: {}]   ;;  %s2724_s5 = inlined_call_operand.hbm [shape: f32[2,128], index: 5, kind: output, shape index: {0}]   ;;  %s2725_s6 = inlined_call_operand.hbm [shape: f32[2,2048], index: 6, kind: output, shape index: {1}]  }
   0x1   :  { %2742 = sst [smem:[#allocation26_spill]] %s2719_s0 }
   0x2   :  { %2743 = sst [smem:[#allocation27_spill]] %s2720_s1 }
   0x3   :  { %12 = vsyncpa [#allocation3], 0 }
   0x4   :  { %13 = vsyncpa [#allocation6], 0 }
   0x5   :  { %15 = vsyncpa [#allocation6 + $0x1], 0 }
   0x6   :  { %16 = vsyncpa [#allocation9], 0 }
   0x7   :  { %17 = vsyncpa [#allocation4], 0 }
   0x8   :  { %18 = vsyncpa [#allocation12], 0 }
   0x9   :  { %20 = vsyncpa [#allocation12 + $0x1], 0  ;;  %s2305_s21 = smov 0   ;;  %s2307_s22 = smov 0  }
   0xa   :  { %s2309_s23 = smov 0   ;;  %s2311_s24 = smov 0  }
   0xb   :  { %s2313_s25 = smov 0   ;;  %s2315_s26 = smov 0  }
   0xc   :  { %s2317_s27 = smov 0   ;;  %s2319_s28 = smov 0  }
   0xd   :  { %s2321_s29 = smov 0  }
   0xe LB: > { %2744 = sst [smem:[#allocation18_spill]] %s2224_s21  ;;  %s35_s30 = sadd.s32 1, %s2252_s28  ;;  %s2256_s29 = sphi %s2321_s29, %s26_s29   ;;  %s2252_s28 = sphi %s2319_s28, %s2791_s28   ;;  %s2248_s27 = sphi %s2317_s27, %s2790_s27   ;;  %s2244_s26 = sphi %s2315_s26, %s2784_s26   ;;  %s2240_s25 = sphi %s2313_s25, %s2789_s25   ;;  %s2236_s24 = sphi %s2311_s24, %s2788_s24   ;;  %s2232_s23 = sphi %s2309_s23, %s2782_s23   ;;  %s2228_s22 = sphi %s2307_s22, %s2787_s22   ;;  %s2224_s21 = sphi %s2305_s21, %s2786_s21  }
   0xf   : > { %2745 = sst [smem:[#allocation19_spill]] %s2232_s23  ;;  %s71_s7 = sadd.s32 1, %s2244_s26 }
  0x10   : > { %2746 = sst [smem:[#allocation20_spill]] %s2244_s26  ;;  %p36_p0 = scmp.ge.s32.totalorder %s35_s30, 3 }
  0x11   : > { %2747 = sst [smem:[#allocation21_spill]] %s2256_s29  ;;  %p78_p1 = scmp.ne.s32.totalorder %s2244_s26, %s2240_s25 }
  0x12   : > { %p79_p2 = scmp.eq.s32.totalorder %s2256_s29, 0  ;;  %s1603_s8 = sadd.s32 4294967295, %s2252_s28 }
  0x13   : > { %s2793_s30 = smov (%p36_p0, %s35_s30), 0  ;;  %p189_p4 = scmp.gt.s32.totalorder %s1603_s8, 0 }
  0x14   : > { %2748 = sst [smem:[#allocation22_spill]] %s2793_s30  ;;  %p2358_p3 = por %p79_p2, %p78_p1 }
  0x15   : > { %s68_s10 = ssub.s32 %s2252_s28, %s2793_s30  ;;  %s1604_s11 = sadd.s32 4294967295, %s2793_s30 }
  0x16   : > { %p69_p5 = scmp.eq.s32.totalorder %s68_s10, 0  ;;  %p192_p6 = scmp.gt.s32.totalorder %s1604_s11, 0 }
  0x17   : > { %s2795_s8 = smov (!%p189_p4, %s1603_s8), 0  ;;  %p1845_p7 = scmp.lt.s32.totalorder %s2256_s29, 3 }
  0x18   : > { %s2368_s12 = scalar_select %p69_p5, %s2244_s26, %s71_s7  }
  0x19   : > { %s2797_s11 = smov (!%p192_p6, %s1604_s11), 0  ;;  %s265_s13 = sand.u32 1, %s2256_s29  }
  0x1a   : > { %2750 = sst [smem:[#allocation23_spill]] %s2368_s12  ;;  %s2726_s14 = sand.u32 1, %s2244_s26  }
  0x1b   : > { %s1609_s15 = sshll.u32 %s2726_s14, 7  ;;  %s1716_s16 = sshll.u32 %s2252_s28, 11 }
  0x1c   : > { %s2751_s1 = sld [smem:[#allocation27_spill]]  ;;  %s269_s20 = scalar_lea.vmem [#allocation5], %s1609_s15 }
  0x1d   : > { %s276_s7 = sshll.u32 %s269_s20, 4  ;;  %p2387_p8 = pnand %p1845_p7, %p2358_p3  ;;  %s2383_s7 = int_to_ptr.vmem [resolvable:$true] %s276_s7 }
  0x1e   : > { %s2391_s14 = scalar_lea.sflag [#allocation6], %s265_s13 }
  0x1f   : > { %s2752_s10 = scalar_select %p2387_p8, 1, 0 }
  0x20   : > { %p2732_p10 = pneg %p2387_p8 }
  0x22   : > { %s2381_s19 = scalar_lea.hbm %s2751_s1, %s1716_s16  ;;  %s2001_s9 = scalar_lea.hbm %s2751_s1, 6144 }
  0x23   : > { %s1996_s17 = scalar_lea.hbm %s2381_s19, 2048  ;;  %p2002_p13 = scmp.lt.u32.totalorder %s2381_s19, %s2751_s1 }
  0x24   : > { %p1997_p9 = scmp.ne.s32.totalorder %s2381_s19, %s1996_s17  ;;  %p2003_p0 = scmp.lt.u32.totalorder %s2001_s9, %s1996_s17 }
  0x25   : > { %p2005_p2 = scmp.lt.u32.totalorder %s1996_s17, %s2381_s19 }
  0x26   : > { %p1999_p11 = pnand %p2732_p10, %p1997_p9  ;;  %p2004_p1 = por %p2003_p0, %p2002_p13 }
  0x28   : > { %p2000_p12 = pneg %p1999_p11  ;;  %p2006_p3 = por %p2005_p2, %p2004_p1 }
  0x2a   : > { %p2007_p4 = pnand %p2006_p3, %p2000_p12 }
  0x2c   : > { %2010 = shalt.err (!%p2007_p4)
}
  0x2d   : > { %s2011_s13 = scalar_lea.vmem %s2383_s7, 2048  ;;  %s2258_s15 = smov [#allocation5]  }
  0x2e   : > { %p2012_p5 = scmp.ne.s32.totalorder %s2383_s7, %s2011_s13  ;;  %s2016_s16 = sshll.u32 %s2258_s15, 4  ;;  %s2017_s16 = int_to_ptr.vmem [resolvable:$false] %s2016_s16 }
  0x2f   : > { %s2018_s18 = scalar_lea.vmem %s2017_s16, 4096  ;;  %p2019_p9 = scmp.lt.s32.totalorder %s2383_s7, %s2017_s16 }
  0x30   : > { %p2014_p6 = pnand %p2012_p5, %p2732_p10  ;;  %p2020_p11 = scmp.lt.s32.totalorder %s2018_s18, %s2011_s13 }
  0x32   : > { %p2015_p7 = pneg %p2014_p6  ;;  %p2021_p13 = por %p2020_p11, %p2019_p9 }
  0x34   : > { %p2022_p0 = pnand %p2021_p13, %p2015_p7 }
  0x36   : > { %2025 = shalt.err (!%p2022_p0)
}
  0x37   : > { %s2259_s17 = smov 512   ;;  %s2260_s9 = smov 32  }
  0x38   : > { %1835 = dma.hbm_to_vmem [thread:$0]  (!%p2387_p8), %s2381_s19, 2048, %s2383_s7, %s2391_s14, %s2259_s17, %s2259_s17, %s2260_s9  }
  0x39   : > { %s2420_s20 = sadd.s32 4294967295, %s2256_s29   ;;  %s1602_s13 = sadd.s32 4294967294, %s2256_s29  }
  0x3a   : > { %p84_p12 = scmp.ne.s32.totalorder %s2240_s25, %s2236_s24  ;;  %p2731_p1 = scmp.eq.s32.totalorder %s2420_s20, 0 }
  0x3b   : > { %s195_s15 = ssub.s32 %s2795_s8, %s2797_s11  ;;  %s199_s16 = sadd.s32 1, %s2232_s23 }
  0x3c   : > { %p197_p2 = scmp.eq.s32.totalorder %s195_s15, 0  ;;  %p2431_p3 = por %p2731_p1, %p84_p12 }
  0x3d   : > { %p209_p4 = scmp.ne.s32.totalorder %s2232_s23, %s2228_s22  ;;  %p2730_p5 = scmp.eq.s32.totalorder %s2420_s20, 2 }
  0x3e   : > { %s2753_s18 = scalar_select %p2431_p3, 1, 0 }
  0x3f   : > { %s2438_s19 = scalar_select %p197_p2, %s2232_s23, %s199_s16  }
  0x40   : > { %p215_p6 = scmp.ne.s32.totalorder %s2228_s22, %s2224_s21  ;;  %p216_p7 = scmp.eq.s32.totalorder %s1602_s13, 2 }
  0x41   : > { %2754 = sst [smem:[#allocation24_spill]] %s2438_s19  ;;  %p1605_p9 = scmp.ge.s32.totalorder %s2256_s29, 1 }
  0x42   : > { %p2446_p11 = por %p2730_p5, %p209_p4  ;;  %p223_p13 = scmp.lt.s32.totalorder %s2256_s29, 4 }
  0x43   : > { %p2451_p0 = por %p216_p7, %p215_p6  ;;  %s2261_s7 = smov [#allocation2]  }
  0x44   : > { %s2755_s24 = scalar_select %p2446_p11, 1, 0 }
  0x45   : > { %s2756_s8 = scalar_select %p2451_p0, 1, 0 }
  0x46   : > { %p2455_p12 = pnand %p1605_p9, %p223_p13  ;;  %s238_s17 = sshll.u32 %s2261_s7, 4  ;;  %s239_s17 = int_to_ptr.vmem [resolvable:$true] %s238_s17 }
  0x47   : > { %2757 = sst [smem:[#allocation25_spill]] %s2756_s8  ;;  %s2262_s9 = smov [#allocation8]  }
  0x48   : > { %s2758_s11 = scalar_select %p2455_p12, 1, 0 }
  0x49   : > { %p1825_p2 = pneg %p2455_p12  ;;  %s248_s13 = sshll.u32 %s2262_s9, 4  ;;  %s2467_s13 = int_to_ptr.vmem [resolvable:$true] %s248_s13 }
  0x4a   : > { %s2760_s16 = sand.u32 1, %s2244_s26   ;;  %s2761_s0 = sld [smem:[#allocation26_spill]] }
  0x4b   : > { %p2463_p4 = pnand %p1825_p2, %p2731_p1  ;;  %s2471_s1 = sshll.u32 %s2760_s16, 3 }
  0x4d   : > { %p2028_p7 = pneg %p2463_p4 }
  0x50   : > { %s2026_s7 = scalar_lea.hbm %s2761_s0, 32 }
  0x51   : > { %p2027_p6 = scmp.ne.s32.totalorder %s2761_s0, %s2026_s7  ;;  %p2033_p2 = scmp.lt.u32.totalorder %s2026_s7, %s2761_s0 }
  0x53   : > { %p2029_p9 = pnand %p2028_p7, %p2027_p6 }
  0x55   : > { %p2030_p13 = pneg %p2029_p9 }
  0x57   : > { %p2035_p5 = pnand %p2033_p2, %p2030_p13 }
  0x59   : > { %2038 = shalt.err (!%p2035_p5)
}
  0x5a   : > { %s2039_s16 = scalar_lea.vmem %s239_s17, 32  ;;  %p2047_p11 = scmp.lt.s32.totalorder %s239_s17, %s239_s17 }
  0x5b   : > { %p2040_p1 = scmp.ne.s32.totalorder %s239_s17, %s2039_s16  ;;  %p2048_p3 = scmp.lt.s32.totalorder %s2039_s16, %s2039_s16 }
  0x5d   : > { %p2042_p10 = pnand %p2040_p1, %p2028_p7  ;;  %p2049_p12 = por %p2048_p3, %p2047_p11 }
  0x5f   : > { %p2043_p0 = pneg %p2042_p10 }
  0x61   : > { %p2050_p8 = pnand %p2049_p12, %p2043_p0 }
  0x63   : > { %2053 = shalt.err (!%p2050_p8)
}
  0x64   : > { %1828 = dma.hbm_to_vmem [thread:$0]  (!%p2463_p4), %s2761_s0, 32, %s239_s17, [#allocation3]  }
  0x65   : > { %s2054_s8 = scalar_lea.hbm %s2722_s3, 8192 }
  0x66   : > { %p2055_p10 = scmp.ne.s32.totalorder %s2722_s3, %s2054_s8  ;;  %p2061_p8 = scmp.lt.u32.totalorder %s2054_s8, %s2722_s3 }
  0x68   : > { %p2057_p1 = pnand %p2055_p10, %p2028_p7 }
  0x6a   : > { %p2058_p3 = pneg %p2057_p1 }
  0x6c   : > { %p2063_p5 = pnand %p2061_p8, %p2058_p3 }
  0x6e   : > { %2066 = shalt.err (!%p2063_p5)
}
  0x6f   : > { %s2067_s17 = scalar_lea.vmem %s2467_s13, 8192  ;;  %p2075_p6 = scmp.lt.s32.totalorder %s2467_s13, %s2467_s13 }
  0x70   : > { %p2068_p11 = scmp.ne.s32.totalorder %s2467_s13, %s2067_s17  ;;  %p2076_p9 = scmp.lt.s32.totalorder %s2067_s17, %s2067_s17 }
  0x72   : > { %p2070_p0 = pnand %p2068_p11, %p2028_p7  ;;  %p2077_p13 = por %p2076_p9, %p2075_p6 }
  0x74   : > { %p2071_p12 = pneg %p2070_p0 }
  0x76   : > { %p2078_p2 = pnand %p2077_p13, %p2071_p12 }
  0x78   : > { %2081 = shalt.err (!%p2078_p2)
}
  0x79   : > { %s2263_s26 = smov 64   ;;  %s2264_s23 = smov 4  }
  0x7a   : > { %1831 = dma.hbm_to_vmem [thread:$0]  (!%p2463_p4), %s2722_s3, 8192, %s2467_s13, [#allocation9], %s2263_s26, %s2263_s26, %s2264_s23  }
  0x7b   : > { %s1717_s19 = sshll.u32 %s2252_s28, 7  ;;  %s290_s8 = scalar_lea.vmem [#allocation7], %s2471_s1 }
  0x7c   : > { %s298_s7 = sshll.u32 %s290_s8, 4  ;;  %s296_s17 = scalar_lea.hbm %s2721_s2, %s1717_s19  ;;  %s299_s7 = int_to_ptr.vmem [resolvable:$true] %s298_s7 }
  0x7d   : > { %s2082_s0 = scalar_lea.hbm %s296_s17, 128  ;;  %p2762_p10 = scmp.ne.s32.totalorder %s2752_s10, 0 }
  0x7e   : > { %p2083_p7 = scmp.ne.s32.totalorder %s296_s17, %s2082_s0  ;;  %s2087_s29 = scalar_lea.hbm %s2721_s2, 384 }
  0x7f   : > { %p2763_p1 = pneg %p2762_p10  ;;  %p2088_p4 = scmp.lt.u32.totalorder %s296_s17, %s2721_s2 }
  0x80   : > { %p2089_p5 = scmp.lt.u32.totalorder %s2087_s29, %s2082_s0  ;;  %p2091_p0 = scmp.lt.u32.totalorder %s2082_s0, %s296_s17 }
  0x81   : > { %p2085_p3 = pnand %p2083_p7, %p2763_p1 }
  0x82   : > { %p2090_p11 = por %p2089_p5, %p2088_p4 }
  0x83   : > { %p2086_p8 = pneg %p2085_p3 }
  0x84   : > { %p2092_p12 = por %p2091_p0, %p2090_p11 }
  0x86   : > { %p2093_p6 = pnand %p2092_p12, %p2086_p8 }
  0x88   : > { %2096 = shalt.err (!%p2093_p6)
}
  0x89   : > { %s2097_s1 = scalar_lea.vmem %s299_s7, 128  ;;  %p2764_p13 = pmov %p2763_p1 }
  0x8a   : > { %p2098_p9 = scmp.ne.s32.totalorder %s299_s7, %s2097_s1  ;;  %s2265_s26 = smov [#allocation7]  }
  0x8b   : > { %s2102_s21 = sshll.u32 %s2265_s26, 4  ;;  %s2103_s21 = int_to_ptr.vmem [resolvable:$false] %s2102_s21 }
  0x8c   : > { %p2100_p2 = pnand %p2098_p9, %p2764_p13  ;;  %s2104_s23 = scalar_lea.vmem %s2103_s21, 256 }
  0x8d   : > { %p2105_p1 = scmp.lt.s32.totalorder %s299_s7, %s2103_s21  ;;  %p2106_p3 = scmp.lt.s32.totalorder %s2104_s23, %s2097_s1 }
  0x8e   : > { %p2101_p7 = pneg %p2100_p2 }
  0x8f   : > { %p2107_p4 = por %p2106_p3, %p2105_p1 }
  0x91   : > { %p2108_p5 = pnand %p2107_p4, %p2101_p7 }
  0x93   : > { %2111 = shalt.err (!%p2108_p5)
}
  0x94   : > { %1838 = dma.hbm_to_vmem [thread:$0]  (!%p2762_p10), %s296_s17, 128, %s299_s7, %s2391_s14  }
  0x95   : > { %p2765_p8 = scmp.ne.s32.totalorder %s2758_s11, 0 }
  0x96   : > { %p2766_p11 = scmp.eq.s32.totalorder (!%p2765_p8), %s2420_s20, 0 }
  0x97   : > { %307 = sbr.rel (%p2765_p8) target bundleno = 722 (0x2d2), region = 40 }
  0x9e   : > { %2203 = dma.done.wait (%p2766_p11), [#allocation3], 32   ;;  %p2767_p0 = pmov %p2766_p11 }
  0x9f   : > { %s313_s0 = sand.u32 1, %s2420_s20   ;;  %s315_s29 = sand.u32 1, %s2240_s25  }
  0xa0   : > { %2205 = vsyncadd (%p2767_p0), [#allocation3], 4294967264  ;;  %s1617_s12 = sshll.u32 %s315_s29, 7  ;;  %s314_s19 = scalar_lea.sflag [#allocation6], %s313_s0 }
  0xa1   : > { %s2548_s8 = scalar_lea.vmem [#allocation5], %s1617_s12  ;;  %p2768_p12 = scmp.ne.s32.totalorder %s2753_s18, 0 }
  0xa3   : > { %2207 = dma.done.wait (%p2768_p12), %s314_s19, 2176  }
  0xa4   : > { %2209 = vsyncadd (%p2768_p12), %s314_s19, 4294965120  ;;  %s2554_s14 = sshll.u32 %s315_s29, 3  ;;  %p2769_p10 = pmov %p2767_p0 }
  0xa5   : > { %s326_s10 = scalar_lea.vmem [#allocation7], %s2554_s14 }
  0xa6   : > { %2211 = dma.done.wait (%p2769_p10), [#allocation9], 8192   ;;  %p2770_p6 = pmov %p2767_p0 }
  0xa7   : > { %s361_s18 = sand.u32 1, %s2228_s22   ;;  %v2266_v0 = vmov 0   ;;  %v372_v1 = vld [vmem:[%s2548_s8] sm:$0xff]  ;;  %v373_v3 = vld [vmem:[%s2548_s8 + $0x8] sm:$0xff]  ;;  %v374_v15 = vld [vmem:[%s2548_s8 + $0x10] sm:$0xff]  ;;  %vm510_vm0 = vcmask 261120   ;;  %v390_v35 = vlaneseq }
  0xa8   : > { %2213 = vsyncadd (%p2770_p6), [#allocation9], 4294959104  ;;  %s2564_s11 = sshll.u32 %s361_s18, 4  ;;  %546 = vmatprep.mubr.bf16.mxu0 %v2266_v0  ;;  %587 = vmatprep.mubr.bf16.mxu1 %v2266_v0  ;;  %v376_v2 = vld [vmem:[%s2548_s8 + $0x20] sm:$0xff]  ;;  %v377_v5 = vld [vmem:[%s2548_s8 + $0x28] sm:$0xff]  ;;  %p1641_p9 = scmp.ne.s32.totalorder %s2248_s27, 0 }
  0xa9   : > { %v1622_v4 = vcombine.high %v372_v1, %v376_v2  ;;  %v1621_v6 = vcombine.low %v372_v1, %v376_v2  ;;  %v380_v7 = vld [vmem:[%s2548_s8 + $0x40] sm:$0xff]  ;;  %v1624_v9 = vcombine.high %v373_v3, %v377_v5  ;;  %v1623_v10 = vcombine.low %v373_v3, %v377_v5  ;;  %v381_v12 = vld [vmem:[%s2548_s8 + $0x48] sm:$0xff]  ;;  %v378_v16 = vld [vmem:[%s2548_s8 + $0x30] sm:$0xff]  ;;  %s2615_s7 = scalar_lea.vmem [#allocation11], %s2564_s11 }
  0xaa   : > { %v384_v8 = vld [vmem:[%s2548_s8 + $0x60] sm:$0xff]  ;;  %v385_v13 = vld [vmem:[%s2548_s8 + $0x68] sm:$0xff]  ;;  %v375_v17 = vld [vmem:[%s2548_s8 + $0x18] sm:$0xff]  ;;  %v1626_v22 = vcombine.high %v374_v15, %v378_v16  ;;  %v1625_v29 = vcombine.low %v374_v15, %v378_v16  ;;  %v2586_v36 = vshrl.u32 %v390_v35, 7 }
  0xab   : > { %v1630_v11 = vcombine.high %v380_v7, %v384_v8  ;;  %514 = vmatprep.subr.bf16.mxu0 %v1622_v4  ;;  %v1632_v14 = vcombine.high %v381_v12, %v385_v13  ;;  %555 = vmatprep.subr.bf16.mxu1 %v1624_v9  ;;  %v1629_v18 = vcombine.low %v380_v7, %v384_v8  ;;  %v370_v19 = vld [vmem:[#allocation2] sm:$0x3]  ;;  %v382_v24 = vld [vmem:[%s2548_s8 + $0x50] sm:$0xff]  ;;  %v388_v38 = vld [vmem:[%s326_s10] sm:$0xff] }
  0xac   : > { %515 = vmatpush1.bf16.msra.mxu0 %v1621_v6  ;;  %v379_v20 = vld [vmem:[%s2548_s8 + $0x38] sm:$0xff]  ;;  %556 = vmatpush1.bf16.msra.mxu1 %v1623_v10  ;;  %v1631_v21 = vcombine.low %v381_v12, %v385_v13  ;;  %v386_v25 = vld [vmem:[%s2548_s8 + $0x70] sm:$0xff]  ;;  %v371_v26 = vpack.c.bf16 %v370_v19, %v370_v19  ;;  %v392_v37 = vsub.s32 0, %v2586_v36  ;;  %v400_v39 = vsub.s32 2, %v2586_v36 }
  0xad   : > { %516 = vmatprep.subr.bf16.mxu0 %v1630_v11  ;;  %557 = vmatprep.subr.bf16.mxu1 %v1632_v14  ;;  %v1628_v23 = vcombine.high %v375_v17, %v379_v20  ;;  %v383_v27 = vld [vmem:[%s2548_s8 + $0x58] sm:$0xff]  ;;  %v1627_v30 = vcombine.low %v375_v17, %v379_v20  ;;  %v1634_v31 = vcombine.high %v382_v24, %v386_v25  ;;  %v396_v40 = vsub.s32 1, %v2586_v36  ;;  %v1932_v14 = vld [vmem:[#allocation8 + $0x40] sm:$0xff] (!%p1641_p9)  }
  0xae   : > { %v387_v28 = vld [vmem:[%s2548_s8 + $0x78] sm:$0xff]  ;;  %v1633_v33 = vcombine.low %v382_v24, %v386_v25  ;;  %v404_v41 = vsub.s32 3, %v2586_v36  ;;  %v393_v42 = vrot.slane %v388_v38, %v392_v37  ;;  %v401_v43 = vrot.slane %v388_v38, %v400_v39  ;;  %v1933_v16 = vld [vmem:[#allocation8 + $0xc0] sm:$0xff] (!%p1641_p9)  }
  0xaf   : > { %v1636_v32 = vcombine.high %v383_v27, %v387_v28  ;;  %v1635_v34 = vcombine.low %v383_v27, %v387_v28  ;;  %v397_v44 = vrot.slane %v388_v38, %v396_v40  ;;  %v408_v50 = vsub.s32 4, %v2586_v36  ;;  %v1935_v20 = vld [vmem:[#allocation8 + $0x80] sm:$0xff] (!%p1641_p9)   ;;  %v1938_v24 = vld [vmem:[#allocation8 + $0x8] sm:$0xff] (!%p1641_p9)   ;;  %v1941_v27 = vld [vmem:[#allocation8 + $0xd0] sm:$0xff] (!%p1641_p9)  }
  0xb0   : > { %517 = vmatpush1.bf16.msra.mxu0 %v1629_v18  ;;  %558 = vmatpush1.bf16.msra.mxu1 %v1631_v21  ;;  %v405_v45 = vrot.slane %v388_v38, %v404_v41  ;;  %v416_v55 = vsub.s32 6, %v2586_v36  ;;  %v412_v56 = vsub.s32 5, %v2586_v36  ;;  %v420_v60 = vsub.s32 7, %v2586_v36  ;;  %v1934_v18 = vld [vmem:[#allocation8] sm:$0xff] (!%p1641_p9)   ;;  %v1939_v25 = vld [vmem:[#allocation8 + $0x88] sm:$0xff] (!%p1641_p9)   ;;  %v1942_v28 = vld [vmem:[#allocation8 + $0x10] sm:$0xff] (!%p1641_p9)  }
  0xb1   : > { %596 = vmatprep.subr.bf16.mxu0 %v1626_v22  ;;  %637 = vmatprep.subr.bf16.mxu1 %v1628_v23  ;;  %v409_v62 = vrot.slane %v388_v38, %v408_v50  ;;  %v1936_v22 = vld [vmem:[#allocation8 + $0x48] sm:$0xff] (!%p1641_p9)   ;;  %v1949_v35 = vld [vmem:[#allocation8 + $0xe0] sm:$0xff] (!%p1641_p9)  }
  0xb2   : > { %v417_v63 = vrot.slane %v388_v38, %v416_v55  ;;  %v421_v1 = vrot.slane %v388_v38, %v420_v60  ;;  %v1937_v23 = vld [vmem:[#allocation8 + $0xc8] sm:$0xff] (!%p1641_p9)   ;;  %v1950_v37 = vld [vmem:[#allocation8 + $0x20] sm:$0xff] (!%p1641_p9)   ;;  %v1962_v55 = vld [vmem:[#allocation8 + $0x38] sm:$0xff] (!%p1641_p9)  }
  0xb3   : > { %1637 = vmatmul.mubr.msk.bf16.vlgmr.msra.gmra.mrb[0].mxu0 %vm510_vm0, %v371_v26  ;;  %1638 = vmatmul.mubr.msk.bf16.vlgmr.msra.gmra.mrb[0].mxu1 %vm510_vm0, %v371_v26  ;;  %v1952_v39 = vld [vmem:[#allocation8 + $0x68] sm:$0xff] (!%p1641_p9)  }
  0xb4   : > { %597 = vmatpush1.bf16.msra.mxu0 %v1625_v29  ;;  %638 = vmatpush1.bf16.msra.mxu1 %v1627_v30  ;;  %v1943_v29 = vld [vmem:[#allocation8 + $0x90] sm:$0xff] (!%p1641_p9)   ;;  %v1944_v30 = vld [vmem:[#allocation8 + $0x58] sm:$0xff] (!%p1641_p9)   ;;  %v1953_v40 = vld [vmem:[#allocation8 + $0xe8] sm:$0xff] (!%p1641_p9)  }
  0xb5   : > { %598 = vmatprep.subr.bf16.mxu0 %v1634_v31  ;;  %639 = vmatprep.subr.bf16.mxu1 %v1636_v32  ;;  %v1945_v31 = vld [vmem:[#allocation8 + $0xd8] sm:$0xff] (!%p1641_p9)   ;;  %v1954_v41 = vld [vmem:[#allocation8 + $0x28] sm:$0xff] (!%p1641_p9)  }
  0xb6   : > { %628 = vmatprep.mubr.bf16.mxu0 %v2266_v0  ;;  %669 = vmatprep.mubr.bf16.mxu1 %v2266_v0  ;;  %v413_v0 = vrot.slane %v388_v38, %v412_v56  ;;  %v1946_v32 = vld [vmem:[#allocation8 + $0x18] sm:$0xff] (!%p1641_p9)   ;;  %v1951_v38 = vld [vmem:[#allocation8 + $0xa0] sm:$0xff] (!%p1641_p9)  }
  0xb8   : > { %599 = vmatpush1.bf16.msra.mxu0 %v1633_v33  ;;  %640 = vmatpush1.bf16.msra.mxu1 %v1635_v34  ;;  %v1947_v33 = vld [vmem:[#allocation8 + $0x98] sm:$0xff] (!%p1641_p9)   ;;  %v1948_v34 = vld [vmem:[#allocation8 + $0x60] sm:$0xff] (!%p1641_p9)  }
  0xb9   : > { %1719 = vmatprep.subr.bf16.mxu0 (!%p1641_p9), %v1932_v14  ;;  %1741 = vmatprep.subr.bf16.mxu1 (!%p1641_p9), %v1933_v16  ;;  %v1975_v14 = vld [vmem:[#allocation8 + $0x190] sm:$0xff] (!%p1641_p9)   ;;  %v1977_v16 = vld [vmem:[#allocation8 + $0x1d8] sm:$0xff] (!%p1641_p9)  }
  0xbb   : > { %1639 = vmatmul.mubr.msk.bf16.vlgmr.msra.gmra.mrb[4].mxu0 %vm510_vm0, %v371_v26  ;;  %1640 = vmatmul.mubr.msk.bf16.vlgmr.msra.gmra.mrb[4].mxu1 %vm510_vm0, %v371_v26  ;;  %v1940_v26 = vld [vmem:[#allocation8 + $0x50] sm:$0xff] (!%p1641_p9)  }
  0xbc   : > { %1720 = vmatpush3.bf16.msra.mxu0 (!%p1641_p9), %v1934_v18  ;;  %1742 = vmatpush3.bf16.msra.mxu1 (!%p1641_p9), %v1935_v20  ;;  %v1979_v18 = vld [vmem:[#allocation8 + $0x198] sm:$0xff] (!%p1641_p9)   ;;  %v1981_v20 = vld [vmem:[#allocation8 + $0x1e0] sm:$0xff] (!%p1641_p9)  }
  0xbd   : > { %1721 = vmatprep.subr.bf16.mxu0 (!%p1641_p9), %v1936_v22  ;;  %1743 = vmatprep.subr.bf16.mxu1 (!%p1641_p9), %v1937_v23  ;;  %v1983_v22 = vld [vmem:[#allocation8 + $0x1a0] sm:$0xff] (!%p1641_p9)   ;;  %v1984_v23 = vld [vmem:[#allocation8 + $0x168] sm:$0xff] (!%p1641_p9)  }
  0xc0   : > { %1722 = vmatpush3.bf16.msra.mxu0 (!%p1641_p9), %v1938_v24  ;;  %1744 = vmatpush3.bf16.msra.mxu1 (!%p1641_p9), %v1939_v25  ;;  %v1985_v24 = vld [vmem:[#allocation8 + $0x1e8] sm:$0xff] (!%p1641_p9)  }
  0xc1   : > { %1723 = vmatprep.subr.bf16.mxu0 (!%p1641_p9), %v1940_v26  ;;  %1745 = vmatprep.subr.bf16.mxu1 (!%p1641_p9), %v1941_v27  ;;  %v1986_v25 = vld [vmem:[#allocation8 + $0x128] sm:$0xff] (!%p1641_p9)   ;;  %v1988_v27 = vld [vmem:[#allocation8 + $0x170] sm:$0xff] (!%p1641_p9)  }
  0xc2   : > { %v1987_v26 = vld [vmem:[#allocation8 + $0x1a8] sm:$0xff] (!%p1641_p9)  }
  0xc4   : > { %1724 = vmatpush3.bf16.msra.mxu0 (!%p1641_p9), %v1942_v28  ;;  %1746 = vmatpush3.bf16.msra.mxu1 (!%p1641_p9), %v1943_v29  ;;  %v1989_v28 = vld [vmem:[#allocation8 + $0x1f0] sm:$0xff] (!%p1641_p9)  }
  0xc5   : > { %1725 = vmatprep.subr.bf16.mxu0 (!%p1641_p9), %v1944_v30  ;;  %1747 = vmatprep.subr.bf16.mxu1 (!%p1641_p9), %v1945_v31  ;;  %v1990_v29 = vld [vmem:[#allocation8 + $0x130] sm:$0xff] (!%p1641_p9)  }
  0xc6   : > { %v1991_v30 = vld [vmem:[#allocation8 + $0x1b0] sm:$0xff] (!%p1641_p9)  }
  0xc8   : > { %1726 = vmatpush3.bf16.msra.mxu0 (!%p1641_p9), %v1946_v32  ;;  %1748 = vmatpush3.bf16.msra.mxu1 (!%p1641_p9), %v1947_v33  ;;  %v1992_v32 = vld [vmem:[#allocation8 + $0x178] sm:$0xff] (!%p1641_p9)  }
  0xc9   : > { %1727 = vmatprep.subr.bf16.mxu0 (!%p1641_p9), %v1948_v34  ;;  %1749 = vmatprep.subr.bf16.mxu1 (!%p1641_p9), %v1949_v35  ;;  %v1993_v34 = vld [vmem:[#allocation8 + $0x1f8] sm:$0xff] (!%p1641_p9)  }
  0xca   : > { %v1994_v35 = vld [vmem:[#allocation8 + $0x138] sm:$0xff] (!%p1641_p9)  }
  0xcc   : > { %1728 = vmatpush3.bf16.msra.mxu0 (!%p1641_p9), %v1950_v37  ;;  %1750 = vmatpush3.bf16.msra.mxu1 (!%p1641_p9), %v1951_v38  ;;  %v1995_v37 = vld [vmem:[#allocation8 + $0x1b8] sm:$0xff] (!%p1641_p9)  }
  0xcd   : > { %1729 = vmatprep.subr.bf16.mxu0 (!%p1641_p9), %v1952_v39  ;;  %1751 = vmatprep.subr.bf16.mxu1 (!%p1641_p9), %v1953_v40 }
  0xd0   : > { %1730 = vmatpush3.bf16.msra.mxu0 (!%p1641_p9), %v1954_v41 }
 0x186   : > { %v548_v46 = vpop.f32.mrb[0].mxu0  ;;  %v589_v48 = vpop.f32.mrb[0].mxu1 }
 0x187   : > { %v2594_v47 = vadd.f32 %v548_v46, %v393_v42  ;;  %v550_v49 = vpop.f32.mrb[1].mxu0  ;;  %v2597_v51 = vadd.f32 %v589_v48, %v401_v43  ;;  %v591_v53 = vpop.f32.mrb[1].mxu1  ;;  %v1955_v42 = vld [vmem:[#allocation8 + $0xa8] sm:$0xff] (!%p1641_p9)   ;;  %v1956_v43 = vld [vmem:[#allocation8 + $0x70] sm:$0xff] (!%p1641_p9)  }
 0x188   : > { %v2599_v52 = vadd.f32 %v550_v49, %v397_v44  ;;  %v552_v54 = vpop.f32.mrb[2].mxu0  ;;  %v2603_v57 = vadd.f32 %v591_v53, %v405_v45  ;;  %v593_v58 = vpop.f32.mrb[2].mxu1  ;;  %1752 = vmatpush3.bf16.msra.mxu1 (!%p1641_p9), %v1955_v42  ;;  %v1957_v44 = vld [vmem:[#allocation8 + $0xf0] sm:$0xff] (!%p1641_p9)   ;;  %1731 = vmatprep.subr.bf16.mxu0 (!%p1641_p9), %v1956_v43  ;;  %v1960_v49 = vld [vmem:[#allocation8 + $0x78] sm:$0xff] (!%p1641_p9)   ;;  %v1642_v42 = vld [vmem:[%s2723_s4] ss:$0 sm:$0xff] (!%p1641_p9) }
 0x189   : > { %v553_v59 = vpop.f32.mrb[3].mxu0  ;;  %v594_v61 = vpop.f32.mrb[3].mxu1  ;;  %v1958_v45 = vld [vmem:[#allocation8 + $0x30] sm:$0xff] (!%p1641_p9)   ;;  %1753 = vmatprep.subr.bf16.mxu1 (!%p1641_p9), %v1957_v44  ;;  %v682_v48 = vmax.f32 (!%p1641_p9), %v2594_v47, 0.0  ;;  %v684_v50 = vmax.f32 (!%p1641_p9), %v2597_v51, 0.0  ;;  %v1961_v53 = vld [vmem:[#allocation8 + $0xf8] sm:$0xff] (!%p1641_p9)  }
 0x18a   : > { %v683_v15 = vmax.f32 (!%p1641_p9), %v2599_v52, 0.0  ;;  %v685_v17 = vmax.f32 (!%p1641_p9), %v2603_v57, 0.0  ;;  %v1959_v46 = vld [vmem:[#allocation8 + $0xb0] sm:$0xff] (!%p1641_p9)   ;;  %1732 = vmatpush3.bf16.msra.mxu0 (!%p1641_p9), %v1958_v45  ;;  %v1963_v58 = vld [vmem:[#allocation8 + $0xb8] sm:$0xff] (!%p1641_p9)   ;;  %v1964_v61 = vld [vmem:[#allocation8 + $0x140] sm:$0xff] (!%p1641_p9)  }
 0x18b   : > { %681 = sbr.rel (%p1641_p9) target bundleno = 654 (0x28e), region = 60  ;;  %1733 = vmatprep.subr.bf16.mxu0 (!%p1641_p9), %v1960_v49  ;;  %v690_v59 = vpack.c.bf16 (!%p1641_p9), %v682_v48, %v682_v48  ;;  %v692_v60 = vpack.c.bf16 (!%p1641_p9), %v684_v50, %v684_v50 }
 0x18c   : > { %v691_v19 = vpack.c.bf16 (!%p1641_p9), %v683_v15, %v683_v15  ;;  %v693_v21 = vpack.c.bf16 (!%p1641_p9), %v685_v17, %v685_v17  ;;  %1754 = vmatpush3.bf16.msra.mxu1 (!%p1641_p9), %v1959_v46  ;;  %v1976_v15 = vld [vmem:[#allocation8 + $0x158] sm:$0xff] (!%p1641_p9)  }
 0x18d   : > { %1755 = vmatprep.subr.bf16.mxu1 (!%p1641_p9), %v1961_v53  ;;  %v1978_v17 = vld [vmem:[#allocation8 + $0x118] sm:$0xff] (!%p1641_p9)  }
 0x18e   : > { %v630_v2 = vpop.f32.mrb[4].mxu0  ;;  %v671_v4 = vpop.f32.mrb[4].mxu1  ;;  %1249 = vmatprep.mubr.bf16.mxu0 (!%p1641_p9), %v691_v19  ;;  %1289 = vmatprep.mubr.bf16.mxu1 (!%p1641_p9), %v693_v21  ;;  %v1980_v19 = vld [vmem:[#allocation8 + $0x160] sm:$0xff] (!%p1641_p9)  }
 0x18f   : > { %v2606_v3 = vadd.f32 %v630_v2, %v409_v62  ;;  %v632_v5 = vpop.f32.mrb[5].mxu0  ;;  %v2608_v6 = vadd.f32 %v671_v4, %v417_v63  ;;  %v673_v8 = vpop.f32.mrb[5].mxu1  ;;  %1734 = vmatpush3.bf16.msra.mxu0 (!%p1641_p9), %v1962_v55  ;;  %v1965_v62 = vld [vmem:[#allocation8 + $0x1c0] sm:$0xff] (!%p1641_p9)   ;;  %v1968_v4 = vld [vmem:[#allocation8 + $0x148] sm:$0xff] (!%p1641_p9)  }
 0x190   : > { %v2610_v7 = vadd.f32 %v632_v5, %v413_v0  ;;  %v634_v9 = vpop.f32.mrb[6].mxu0  ;;  %v2612_v10 = vadd.f32 %v673_v8, %v421_v1  ;;  %v675_v11 = vpop.f32.mrb[6].mxu1  ;;  %1756 = vmatpush3.bf16.msra.mxu1 (!%p1641_p9), %v1963_v58  ;;  %1763 = vmatprep.subr.bf16.mxu0 (!%p1641_p9), %v1964_v61  ;;  %v1966_v0 = vld [vmem:[#allocation8 + $0x100] sm:$0xff] (!%p1641_p9)   ;;  %v1969_v5 = vld [vmem:[#allocation8 + $0x1c8] sm:$0xff] (!%p1641_p9)  }
 0x191   : > { %v635_v12 = vpop.f32.mrb[7].mxu0  ;;  %v676_v13 = vpop.f32.mrb[7].mxu1  ;;  %1785 = vmatprep.subr.bf16.mxu1 (!%p1641_p9), %v1965_v62  ;;  %v1967_v2 = vld [vmem:[#allocation8 + $0x180] sm:$0xff] (!%p1641_p9)   ;;  %v1970_v8 = vld [vmem:[#allocation8 + $0x108] sm:$0xff] (!%p1641_p9)   ;;  %v1972_v11 = vld [vmem:[#allocation8 + $0x150] sm:$0xff] (!%p1641_p9)   ;;  %v686_v31 = vmax.f32 (!%p1641_p9), %v2606_v3, 0.0 }
 0x192   : > { %v687_v54 = vmax.f32 %v2610_v7, 0.0  ;;  %v689_v56 = vmax.f32 %v2612_v10, 0.0  ;;  %1250 = vmatmul.mubr.bf16.vlgmr.msra.gmra.mrb[0].mxu0 %v690_v59  ;;  %v1971_v9 = vld [vmem:[#allocation8 + $0x188] sm:$0xff]   ;;  %v1973_v12 = vld [vmem:[#allocation8 + $0x1d0] sm:$0xff]   ;;  %v1982_v21 = vld [vmem:[#allocation8 + $0x120] sm:$0xff]   ;;  %v688_v33 = vmax.f32 %v2608_v6, 0.0 }
 0x193   : > { %1290 = vmatmul.mubr.bf16.vlgmr.msra.gmra.mrb[0].mxu1 %v692_v60  ;;  %1764 = vmatpush3.bf16.msra.mxu0 %v1966_v0  ;;  %v1974_v13 = vld [vmem:[#allocation8 + $0x110] sm:$0xff]   ;;  %v694_v38 = vpack.c.bf16 %v686_v31, %v686_v31 }
 0x194   : > { %v695_v63 = vpack.c.bf16 %v687_v54, %v687_v54  ;;  %v697_v1 = vpack.c.bf16 %v689_v56, %v689_v56  ;;  %1786 = vmatpush3.bf16.msra.mxu1 %v1967_v2  ;;  %1765 = vmatprep.subr.bf16.mxu0 %v1968_v4  ;;  %v696_v39 = vpack.c.bf16 %v688_v33, %v688_v33 }
 0x195   : > { %1787 = vmatprep.subr.bf16.mxu1 %v1969_v5 }
 0x196   : > { %1329 = vmatprep.mubr.bf16.mxu0 %v695_v63  ;;  %1369 = vmatprep.mubr.bf16.mxu1 %v697_v1 }
 0x197   : > { %1766 = vmatpush3.bf16.msra.mxu0 %v1970_v8 }
 0x198   : > { %1788 = vmatpush3.bf16.msra.mxu1 %v1971_v9  ;;  %1767 = vmatprep.subr.bf16.mxu0 %v1972_v11 }
 0x199   : > { %1789 = vmatprep.subr.bf16.mxu1 %v1973_v12 }
 0x19b   : > { %1768 = vmatpush3.bf16.msra.mxu0 %v1974_v13 }
 0x19c   : > { %1790 = vmatpush3.bf16.msra.mxu1 %v1975_v14  ;;  %1769 = vmatprep.subr.bf16.mxu0 %v1976_v15 }
 0x19d   : > { %1791 = vmatprep.subr.bf16.mxu1 %v1977_v16 }
 0x19f   : > { %1770 = vmatpush3.bf16.msra.mxu0 %v1978_v17 }
 0x1a0   : > { %1792 = vmatpush3.bf16.msra.mxu1 %v1979_v18  ;;  %1771 = vmatprep.subr.bf16.mxu0 %v1980_v19 }
 0x1a1   : > { %1793 = vmatprep.subr.bf16.mxu1 %v1981_v20 }
 0x1a3   : > { %1772 = vmatpush3.bf16.msra.mxu0 %v1982_v21 }
 0x1a4   : > { %1794 = vmatpush3.bf16.msra.mxu1 %v1983_v22  ;;  %1773 = vmatprep.subr.bf16.mxu0 %v1984_v23 }
 0x1a5   : > { %1795 = vmatprep.subr.bf16.mxu1 %v1985_v24 }
 0x1a7   : > { %1774 = vmatpush3.bf16.msra.mxu0 %v1986_v25 }
 0x1a8   : > { %1796 = vmatpush3.bf16.msra.mxu1 %v1987_v26  ;;  %1775 = vmatprep.subr.bf16.mxu0 %v1988_v27 }
 0x1a9   : > { %1797 = vmatprep.subr.bf16.mxu1 %v1989_v28 }
 0x1ab   : > { %1776 = vmatpush3.bf16.msra.mxu0 %v1990_v29 }
 0x1ac   : > { %1798 = vmatpush3.bf16.msra.mxu1 %v1991_v30  ;;  %1777 = vmatprep.subr.bf16.mxu0 %v1992_v32 }
 0x1ad   : > { %1799 = vmatprep.subr.bf16.mxu1 %v1993_v34 }
 0x1af   : > { %1778 = vmatpush3.bf16.msra.mxu0 %v1994_v35 }
 0x1b0   : > { %1800 = vmatpush3.bf16.msra.mxu1 %v1995_v37 }
 0x1b2   : > { %1330 = vmatmul.mubr.bf16.vlgmr.msra.gmra.mrb[4].mxu0 %v694_v38 }
 0x1b3   : > { %1370 = vmatmul.mubr.bf16.vlgmr.msra.gmra.mrb[4].mxu1 %v696_v39 }
 0x265   : > { %v1735_v40 = vpop.f32.mrb[0].mxu0 }
 0x266   : > { %v1757_v41 = vpop.f32.mrb[0].mxu1  ;;  %v1736_v43 = vpop.f32.mrb[1].mxu0 }
 0x267   : > { %v1737_v44 = vadd.f32 %v1736_v43, %v1735_v40  ;;  %v1758_v45 = vpop.f32.mrb[1].mxu1  ;;  %v1738_v46 = vpop.f32.mrb[2].mxu0 }
 0x268   : > { %v1759_v48 = vadd.f32 %v1758_v45, %v1757_v41  ;;  %v1760_v49 = vpop.f32.mrb[2].mxu1  ;;  %v1739_v50 = vpop.f32.mrb[3].mxu0 }
 0x269   : > { %v1252_v53 = vadd.f32 %v1737_v44, %v1642_v42  ;;  %v1761_v54 = vpop.f32.mrb[3].mxu1 }
 0x26b   : > { %v1292_v55 = vadd.f32 %v1759_v48, %v1252_v53 }
 0x285   : > { %v1779_v56 = vpop.f32.mrb[4].mxu0 }
 0x286   : > { %v1801_v58 = vpop.f32.mrb[4].mxu1  ;;  %v1780_v59 = vpop.f32.mrb[5].mxu0 }
 0x287   : > { %v1781_v60 = vadd.f32 %v1780_v59, %v1779_v56  ;;  %v1802_v61 = vpop.f32.mrb[5].mxu1  ;;  %v1782_v62 = vpop.f32.mrb[6].mxu0 }
 0x288   : > { %v1803_v63 = vadd.f32 %v1802_v61, %v1801_v58  ;;  %v1804_v0 = vpop.f32.mrb[6].mxu1  ;;  %v1783_v1 = vpop.f32.mrb[7].mxu0 }
 0x289   : > { %v1332_v2 = vadd.f32 %v1781_v60, %v1292_v55  ;;  %v1805_v4 = vpop.f32.mrb[7].mxu1 }
 0x28b   : > { %v1372_v5 = vadd.f32 %v1803_v63, %v1332_v2 }
 0x28d   : > { %1377 = vst [vmem:[#allocation10] sm:$0x3] %v1372_v5 }
 0x28e PF: > { %p1707_p13 = scmp.le.s32.totalorder %s2248_s27, 0 }
 0x28f   : > { %v2267_v8 = vmov (!%p1707_p13), 1983009808   ;;  %v1390_v11 = vcombine.low (!%p1707_p13), %v2594_v47, %v2599_v52  ;;  %v1391_v12 = vcombine.low (!%p1707_p13), %v2597_v51, %v2603_v57  ;;  %v1407_v14 = vcombine.low (!%p1707_p13), %v2606_v3, %v2610_v7 }
 0x290   : > { %1381 = sbr.rel (%p1707_p13) target bundleno = 667 (0x29b), region = 64  ;;  %v1393_v9 = vunpack.c.l.s4 (!%p1707_p13), %v2267_v8  ;;  %v1408_v15 = vcombine.low (!%p1707_p13), %v2608_v6, %v2612_v10 }
 0x292   : > { %v1394_v13 = vunpack.c.0.s8 (!%p1707_p13), %v1393_v9 }
 0x294   : > { %v1397_v16 = vsub.s32 (!%p1707_p13), %v1394_v13, %v2586_v36 }
 0x296   : > { %v1398_v17 = vrot.slane (!%p1707_p13), %v1390_v11, %v1397_v16  ;;  %v1405_v18 = vrot.slane (!%p1707_p13), %v1391_v12, %v1397_v16  ;;  %v1415_v19 = vrot.slane (!%p1707_p13), %v1407_v14, %v1397_v16  ;;  %v1422_v20 = vrot.slane (!%p1707_p13), %v1408_v15, %v1397_v16 }
 0x298   : > { %v1406_v21 = vcombine.low %v1398_v17, %v1405_v18  ;;  %v1423_v22 = vcombine.low %v1415_v19, %v1422_v20 }
 0x29a   : > { %1426 = vst [vmem:[%s2615_s7] sm:$0xff] %v1406_v21  ;;  %1427 = vst [vmem:[%s2615_s7 + $0x8] sm:$0xff] %v1423_v22 }
 0x29b PF: > { %s2268_s17 = smov [#allocation10]   ;;  %s1710_s30 = sadd.s32 4294967295, %s2248_s27 }
 0x29c   : > { %s1442_s15 = sshll.u32 %s2268_s17, 4  ;;  %p2771_p7 = scmp.eq.s32.totalorder %s2420_s20, 2  ;;  %s1443_s15 = int_to_ptr.vmem [resolvable:$true] %s1442_s15 }
 0x29d   : > { %s2112_s13 = scalar_lea.vmem %s1443_s15, 32  ;;  %p2119_p4 = scmp.lt.s32.totalorder %s1443_s15, %s1443_s15 }
 0x29e   : > { %p2113_p2 = scmp.ne.s32.totalorder %s1443_s15, %s2112_s13  ;;  %p2120_p5 = scmp.lt.s32.totalorder %s2112_s13, %s2112_s13 }
 0x2a0   : > { %p2114_p1 = pnand %p2113_p2, %p2771_p7  ;;  %p2121_p8 = por %p2120_p5, %p2119_p4 }
 0x2a2   : > { %p2115_p3 = pneg %p2114_p1 }
 0x2a4   : > { %p2122_p11 = pnand %p2121_p8, %p2115_p3 }
 0x2a6   : > { %2125 = shalt.err (!%p2122_p11)
}
 0x2a7   : > { %s2126_s21 = scalar_lea.hbm %s2724_s5, 32  ;;  %p2772_p12 = pmov %p2771_p7 }
 0x2a8   : > { %p2127_p0 = scmp.ne.s32.totalorder %s2724_s5, %s2126_s21  ;;  %p2132_p9 = scmp.lt.u32.totalorder %s2126_s21, %s2724_s5 }
 0x2aa   : > { %p2128_p10 = pnand %p2127_p0, %p2772_p12 }
 0x2ac   : > { %p2129_p6 = pneg %p2128_p10 }
 0x2ae   : > { %p2134_p13 = pnand %p2132_p9, %p2129_p6 }
 0x2b0   : > { %2137 = shalt.err (!%p2134_p13)
}
 0x2b1   : > { %p2773_p2 = pmov %p2771_p7  ;;  %p1450_p7 = scmp.gt.s32.totalorder %s1710_s30, 0 }
 0x2b2   : > { %s1461_s8 = sshll.u32 %s2615_s7, 4  ;;  %s1429_s16 = scalar_lea.sflag [#allocation12], %s361_s18  ;;  %s2661_s8 = int_to_ptr.vmem [resolvable:$true] %s1461_s8 }
 0x2b3   : > { %1820 = dma.vmem_to_hbm [thread:$0]  (%p2773_p2), %s1443_s15, 32, %s2724_s5, [#allocation4]  }
 0x2b4   : > { %s2799_s30 = smov (!%p1450_p7, %s1710_s30), 0  ;;  %s2138_s17 = scalar_lea.vmem %s2661_s8, 256 }
 0x2b5   : > { %s1718_s14 = sshll.u32 %s2799_s30, 8  ;;  %p2139_p1 = scmp.ne.s32.totalorder %s2661_s8, %s2138_s17 }
 0x2b6   : > { %s1459_s9 = scalar_lea.hbm %s2725_s6, %s1718_s14  ;;  %p2774_p3 = scmp.ne.s32.totalorder %s2755_s24, 0 }
 0x2b7   : > { %s2269_s15 = smov [#allocation11]  }
 0x2b8   : > { %p2140_p4 = pnand %p2139_p1, %p2774_p3  ;;  %s2142_s7 = sshll.u32 %s2269_s15, 4  ;;  %s2143_s7 = int_to_ptr.vmem [resolvable:$false] %s2142_s7 }
 0x2b9   : > { %s2144_s13 = scalar_lea.vmem %s2143_s7, 512  ;;  %p2145_p8 = scmp.lt.s32.totalorder %s2661_s8, %s2143_s7 }
 0x2ba   : > { %p2141_p5 = pneg %p2140_p4  ;;  %p2146_p11 = scmp.lt.s32.totalorder %s2144_s13, %s2138_s17 }
 0x2bc   : > { %p2147_p0 = por %p2146_p11, %p2145_p8 }
 0x2be   : > { %p2148_p12 = pnand %p2147_p0, %p2141_p5 }
 0x2c0   : > { %2151 = shalt.err (!%p2148_p12)
}
 0x2c1   : > { %s2152_s30 = scalar_lea.hbm %s1459_s9, 256  ;;  %s2156_s26 = scalar_lea.hbm %s2725_s6, 512 }
 0x2c2   : > { %p2153_p10 = scmp.ne.s32.totalorder %s1459_s9, %s2152_s30  ;;  %p2157_p13 = scmp.lt.u32.totalorder %s1459_s9, %s2725_s6 }
 0x2c3   : > { %p2158_p2 = scmp.lt.u32.totalorder %s2156_s26, %s2152_s30  ;;  %p2160_p1 = scmp.lt.u32.totalorder %s2152_s30, %s1459_s9 }
 0x2c4   : > { %p2154_p6 = pnand %p2153_p10, %p2774_p3 }
 0x2c5   : > { %p2159_p7 = por %p2158_p2, %p2157_p13 }
 0x2c6   : > { %p2155_p9 = pneg %p2154_p6 }
 0x2c7   : > { %p2161_p4 = por %p2160_p1, %p2159_p7 }
 0x2c9   : > { %p2162_p5 = pnand %p2161_p4, %p2155_p9 }
 0x2cb   : > { %2165 = shalt.err (!%p2162_p5)
}
 0x2cc   : > { %1821 = dma.vmem_to_hbm [thread:$0]  (%p2774_p3), %s2661_s8, 256, %s1459_s9, %s1429_s16  }
 0x2cd   : > { %p2775_p8 = scmp.eq.s32.totalorder %s2420_s20, 2 }
 0x2cf   : > { %2215 = dma.done.wait (%p2775_p8), [#allocation4], 32   ;;  %p2776_p11 = pmov %p2775_p8 }
 0x2d1   : > { %2217 = vsyncadd (%p2776_p11), [#allocation4], 4294967264 }
 0x2d2 PF: > { %s2777_s0 = sld [smem:[#allocation21_spill]]  ;;  %s2778_s27 = sld [smem:[#allocation18_spill]] }
 0x2d3   : > { %s2779_s29 = sld [smem:[#allocation25_spill]] }
 0x2d8   : > { %p1850_p0 = scmp.ge.s32.totalorder %s2777_s0, 2  ;;  %s1477_s12 = sand.u32 1, %s2778_s27  }
 0x2d9   : > { %p2780_p12 = scmp.ne.s32.totalorder %s2779_s29, 0  ;;  %s1478_s19 = scalar_lea.sflag [#allocation12], %s1477_s12 }
 0x2db   : > { %p1840_p10 = pnand %p1850_p0, %p2780_p12 }
 0x2dd   : > { %2219 = dma.done.wait (!%p1840_p10), %s1478_s19, 256  }
 0x2de   : > { %2221 = vsyncadd (!%p1840_p10), %s1478_s19, 4294967040  ;;  %s26_s29 = sadd.s32 1, %s2777_s0   ;;  %s2781_s24 = sld [smem:[#allocation19_spill]] }
 0x2df   : > { %p23_p6 = scmp.ge.s32.totalorder %s26_s29, 5   ;;  %s2782_s23 = sld [smem:[#allocation24_spill]] }
 0x2e0   : > { %s2783_s20 = sld [smem:[#allocation20_spill]]  ;;  %s2784_s26 = sld [smem:[#allocation23_spill]] }
 0x2e1   : > { %s2785_s8 = sld [smem:[#allocation22_spill]]  ;;  %s2786_s21 = smov %s2228_s22 }
 0x2e2   : > { %s2790_s27 = smov %s2252_s28  ;;  %25 = sbr.rel (!%p23_p6) target bundleno = 14 (0xe), region = 124 }
 0x2e4   : > { %s2787_s22 = smov %s2781_s24  ;;  %s2788_s24 = smov %s2240_s25 }
 0x2e6   : > { %s2789_s25 = smov %s2783_s20 }
 0x2e7   : > { %s2791_s28 = smov %s2785_s8 }
 0x2e9   :  { %1483 = vsyncpa [#allocation3], 1 }
 0x2ea   :  { %1485 = vsyncpa [#allocation3 + $0x1], 1 }
 0x2eb   :  { %1486 = vsyncpa [#allocation6], 1 }
 0x2ec   :  { %1488 = vsyncpa [#allocation6 + $0x1], 1 }
 0x2ed   :  { %1489 = vsyncpa [#allocation9], 1 }
 0x2ee   :  { %1490 = vsyncpa [#allocation4], 1 }
 0x2ef   :  { %1492 = vsyncpa [#allocation4 + $0x1], 1 }
 0x2f0   :  { %1493 = vsyncpa [#allocation12], 1 }
 0x2f1   :  { %1495 = vsyncpa [#allocation12 + $0x1], 1 }

</bundles_post_ra>
